<compile_context>
chip_gen: v7x
topology: tpu7x:2x2x1
jax: 0.10.0
libtpu: 0.0.40
codegen_flags: <defaults>
</compile_context>

<pallas_src>
import functools

import numpy as np
import jax
import jax.numpy as jnp
from jax.experimental import pallas as pl
from jax.experimental.pallas import tpu as pltpu


def to_3tuple(x):
    if isinstance(x, (tuple, list)):
        assert len(x) == 3
        return tuple(x)
    return (x, x, x)


def _round_up(n, m):
    return ((n + m - 1) // m) * m


# ----------------------------- Pallas kernel ------------------------------- #

def _patch_proj_kernel(p_ref, w_ref, b_ref, o_ref):
    # (tm, K)bf16 @ (K, E_pad)bf16 on the MXU with f32 accumulation, + f32 bias.
    acc = jnp.dot(p_ref[...], w_ref[...], preferred_element_type=jnp.float32)
    o_ref[...] = (acc + b_ref[...]).astype(o_ref.dtype)


def _choose_tiling(M, K, E_pad):
    """Pick the largest M tile whose double-buffered footprint fits a v7x-safe
    VMEM budget, and a matching vmem_limit_bytes."""
    bf16, f32 = 2, 4
    budget = 40 * 1024 * 1024                     # leave headroom on v7x (64 MiB)
    w_bytes = 2 * K * E_pad * bf16                # weight (alloc'd double-buffered)
    b_bytes = 2 * E_pad * f32                     # bias
    tm = min(1024, _round_up(M, 8))
    while tm > 8:
        stream = 2 * tm * K * bf16 + 2 * tm * E_pad * f32   # patches + output, 2-deep
        if w_bytes + b_bytes + stream <= budget:
            break
        tm = max(8, _round_up(tm // 2, 8))
    need = w_bytes + b_bytes + 2 * tm * K * bf16 + 2 * tm * E_pad * f32
    vmem_limit = int(min(max(need * 3 // 2 + (2 << 20), 16 << 20), 64 << 20))
    return tm, vmem_limit


def patch_proj_matmul(patches, w_pad, bias_pad):
    """patches: (M, K); w_pad: (K, E_pad) bf16; bias_pad: (1, E_pad) f32.
    Returns (M, E_pad) float32 = patches @ w_pad + bias_pad."""
    M, K = patches.shape
    Kw, E_pad = w_pad.shape
    assert K == Kw and E_pad % 128 == 0

    tm, vmem_limit = _choose_tiling(M, K, E_pad)
    M_pad = _round_up(M, tm)

    p = patches.astype(jnp.bfloat16)
    if M_pad != M:
        p = jnp.pad(p, ((0, M_pad - M), (0, 0)))

    cost = pl.CostEstimate(
        flops=2 * M_pad * K * E_pad,
        transcendentals=0,
        bytes_accessed=(M_pad * K * 2 + K * E_pad * 2 + E_pad * 4
                        + M_pad * E_pad * 4),
    )

    out = pl.pallas_call(
        _patch_proj_kernel,
        out_shape=jax.ShapeDtypeStruct((M_pad, E_pad), jnp.float32),
        grid_spec=pltpu.PrefetchScalarGridSpec(
            num_scalar_prefetch=0,
            grid=(M_pad // tm,),
            in_specs=[
                pl.BlockSpec((tm, K), lambda i: (i, 0)),      # streaming patch tile
                pl.BlockSpec((K, E_pad), lambda i: (0, 0)),   # weight, VMEM-resident
                pl.BlockSpec((1, E_pad), lambda i: (0, 0)),   # bias, VMEM-resident
            ],
            out_specs=pl.BlockSpec((tm, E_pad), lambda i: (i, 0)),  # lane-dense store
        ),
        compiler_params=pltpu.CompilerParams(
            dimension_semantics=("parallel",),
            vmem_limit_bytes=vmem_limit,
        ),
        cost_estimate=cost,
    )(p, w_pad, bias_pad)
    return out[:M]


# ------------------------------ Forward impl -------------------------------- #

def _patch_embed3d_apply(x, w_pad, bias_pad, *, img_size, patch_size, grid_size,
                         in_chans, embed_dim, flatten, in_chan_last):
    B, L, S = x.shape
    D, H, W = img_size
    pd, ph, pw = patch_size
    gd, gh, gw = grid_size
    C = in_chans
    N = B * L

    if in_chan_last:
        xr = x.reshape(N, D, H, W, C)                       # (N, D, H, W, C)
    else:
        xr = x.reshape(N, C, D, H, W).transpose(0, 2, 3, 4, 1)

    # Extract non-overlapping 3D patches; per-patch K ordering (c, kd, kh, kw)
    # matches the reshaped torch Conv3d weight.  The bf16 cast fuses into this
    # transpose under jit so the patch tensor is written to HBM once, halved.
    xr = xr.reshape(N, gd, pd, gh, ph, gw, pw, C)
    xr = xr.transpose(0, 1, 3, 5, 7, 2, 4, 6)               # (N,gd,gh,gw,C,pd,ph,pw)
    patches = xr.reshape(N * gd * gh * gw, C * pd * ph * pw).astype(jnp.bfloat16)

    out = patch_proj_matmul(patches, w_pad, bias_pad)       # (M, E_pad) f32
    out = out[:, :embed_dim]
    out = out.reshape(N, gd * gh * gw, embed_dim)
    if not flatten:
        out = out.reshape(N, gd, gh, gw, embed_dim).transpose(0, 4, 1, 2, 3)
    # norm: Identity (norm_layer=None)
    return out


# ------------------------------ Module port -------------------------------- #

class PatchEmbed3D:
    """3D Image to Patch Embedding (norm_layer=None -> Identity)."""

    def __init__(self, img_size=8, patch_size=4, in_chans=2, embed_dim=32,
                 norm_layer=None, flatten=True, in_chan_last=True,
                 key=jax.random.PRNGKey(42)):
        assert norm_layer is None, "norm_layer=None (Identity) is what this port covers"
        self.img_size = to_3tuple(img_size)
        self.patch_size = to_3tuple(patch_size)
        self.grid_size = tuple(im // pa for im, pa in zip(self.img_size, self.patch_size))
        self.in_chans = in_chans
        self.embed_dim = embed_dim
        self.num_patches = int(np.prod(self.grid_size))
        self.flatten = flatten
        self.in_chan_last = in_chan_last

        pd, ph, pw = self.patch_size
        K = in_chans * pd * ph * pw
        E_pad = _round_up(embed_dim, 128)

        wkey, bkey = jax.random.split(key)
        bound = 1.0 / np.sqrt(K)
        # Deterministic synthetic Conv3d parameters (torch layout: (E, C, kD, kH, kW)).
        self.weight = jax.random.uniform(
            wkey, (embed_dim, in_chans, pd, ph, pw),
            minval=-bound, maxval=bound, dtype=jnp.float32)
        self.bias = jax.random.uniform(
            bkey, (embed_dim,), minval=-bound, maxval=bound, dtype=jnp.float32)

        # GEMM-ready params: weight (K, E) zero-padded to lane-dense (K, E_pad)
        # in bf16; bias (1, E_pad) in f32 (added post-accumulation).
        w_mat = self.weight.reshape(embed_dim, K).T
        self.w_pad = jnp.zeros((K, E_pad), jnp.bfloat16).at[:, :embed_dim].set(
            w_mat.astype(jnp.bfloat16))
        self.bias_pad = jnp.zeros((1, E_pad), jnp.float32).at[:, :embed_dim].set(
            self.bias.reshape(1, embed_dim))

        self._apply = jax.jit(functools.partial(
            _patch_embed3d_apply,
            img_size=self.img_size, patch_size=self.patch_size,
            grid_size=self.grid_size, in_chans=self.in_chans,
            embed_dim=self.embed_dim, flatten=self.flatten,
            in_chan_last=self.in_chan_last))

    def forward(self, x):
        B, L, S = x.shape
        assert S == int(np.prod(self.img_size)) * self.in_chans, (
            f"Input image total size {S} doesn't match model configuration")
        return self._apply(x, self.w_pad, self.bias_pad)

    __call__ = forward


# ------------------------------ Reference ---------------------------------- #

def reference_forward(module, x):
    """Pure-JAX f32 reference using lax conv, mirroring the PyTorch forward."""
    B, L, S = x.shape
    D, H, W = module.img_size
    C = module.in_chans
    xr = x.reshape(B * L, D, H, W, C).transpose(0, 4, 1, 2, 3)   # NCDHW
    y = jax.lax.conv_general_dilated(
        xr, module.weight,
        window_strides=module.patch_size, padding="VALID",
        dimension_numbers=("NCDHW", "OIDHW", "NCDHW"))
    y = y + module.bias.reshape(1, -1, 1, 1, 1)
    y = y.reshape(B * L, module.embed_dim, module.num_patches).transpose(0, 2, 1)
    return y


# --------------------------------- Main ------------------------------------ #

if __name__ == "__main__":
    # Small shapes: img_size=(8,8,8), patch=(4,4,4), C=2, E=32, B=2, L=2
    # => S = 8*8*8*2 = 1024, num_patches = 8, K = 128, M = 32, E_pad = 128.
    B, L = 2, 2
    module = PatchEmbed3D(img_size=8, patch_size=4, in_chans=2, embed_dim=32,
                          flatten=True, in_chan_last=True,
                          key=jax.random.PRNGKey(42))
    S = int(np.prod(module.img_size)) * module.in_chans
    x = jax.random.normal(jax.random.PRNGKey(0), (B, L, S), dtype=jnp.float32)

    out = jax.block_until_ready(module.forward(x))
    ref = jax.block_until_ready(reference_forward(module, x))

    assert out.shape == (B * L, module.num_patches, module.embed_dim), out.shape
    # bf16 streaming inputs with f32 MXU accumulation -> looser tolerance than f32.
    np.testing.assert_allclose(np.asarray(out), np.asarray(ref), rtol=3e-2, atol=3e-2)

    print("KERNEL_OK")
</pallas_src>

<mosaic_0001>
module attributes {stable_mosaic.version = 11 : i64} {
  func.func @_patch_proj_kernel(%arg0: i32, %arg1: memref<32x128xbf16, #tpu.memory_space<vmem>>, %arg2: memref<128x128xbf16, #tpu.memory_space<vmem>>, %arg3: memref<1x128xf32, #tpu.memory_space<vmem>>, %arg4: memref<32x128xf32, #tpu.memory_space<vmem>>) attributes {dimension_semantics = [#tpu.dimension_semantics<parallel>], iteration_bounds = array<i64: 1>, scalar_prefetch = 0 : i64, scratch_operands = 0 : i64, tpu.core_type = #tpu.core_type<tc>, window_params = [{transform_indices = @transform_0, window_bounds = array<i64: 32, 128>}, {pipeline_mode = #tpu.pipeline_mode<synchronous>, transform_indices = @transform_1, window_bounds = array<i64: 128, 128>}, {pipeline_mode = #tpu.pipeline_mode<synchronous>, transform_indices = @transform_2, window_bounds = array<i64: 1, 128>}, {transform_indices = @transform_3, window_bounds = array<i64: 32, 128>}]} {
    %c0 = arith.constant 0 : index
    %c0_0 = arith.constant 0 : index
    %0 = vector.load %arg1[%c0, %c0_0] : memref<32x128xbf16, #tpu.memory_space<vmem>>, vector<32x128xbf16>
    %c0_1 = arith.constant 0 : index
    %c0_2 = arith.constant 0 : index
    %1 = vector.load %arg2[%c0_1, %c0_2] : memref<128x128xbf16, #tpu.memory_space<vmem>>, vector<128x128xbf16>
    %cst = arith.constant dense<0.000000e+00> : vector<32x128xf32>
    %2 = tpu.matmul %0, %1, %cst {dimension_numbers = #tpu.dot_dimension_numbers<[1], [0], [0], [1], [0, 0, 1, 1], [], []>} : vector<32x128xbf16>, vector<128x128xbf16>, vector<32x128xf32> -> vector<32x128xf32>
    %c0_3 = arith.constant 0 : index
    %c0_4 = arith.constant 0 : index
    %3 = vector.load %arg3[%c0_3, %c0_4] : memref<1x128xf32, #tpu.memory_space<vmem>>, vector<1x128xf32>
    %4 = vector.broadcast %3 : vector<1x128xf32> to vector<32x128xf32>
    %5 = arith.addf %2, %4 : vector<32x128xf32>
    %c0_5 = arith.constant 0 : index
    %c0_6 = arith.constant 0 : index
    %6 = vector.load %arg4[%c0_5, %c0_6] : memref<32x128xf32, #tpu.memory_space<vmem>>, vector<32x128xf32>
    tpu.vector_store %arg4[%c0_5, %c0_6], %5 {strides = array<i32>} : memref<32x128xf32, #tpu.memory_space<vmem>>, vector<32x128xf32>,
    return
  }
  func.func @transform_0(%arg0: i32) -> (i32, i32) {
    %c0_i32 = arith.constant 0 : i32
    %c0_i32_0 = arith.constant 0 : i32
    return %arg0, %c0_i32 : i32, i32
  }
  func.func @transform_1(%arg0: i32) -> (i32, i32) {
    %c0_i32 = arith.constant 0 : i32
    %c0_i32_0 = arith.constant 0 : i32
    %c0_i32_1 = arith.constant 0 : i32
    return %c0_i32, %c0_i32_0 : i32, i32
  }
  func.func @transform_2(%arg0: i32) -> (i32, i32) {
    %c0_i32 = arith.constant 0 : i32
    %c0_i32_0 = arith.constant 0 : i32
    %c0_i32_1 = arith.constant 0 : i32
    return %c0_i32, %c0_i32_0 : i32, i32
  }
  func.func @transform_3(%arg0: i32) -> (i32, i32) {
    %c0_i32 = arith.constant 0 : i32
    %c0_i32_0 = arith.constant 0 : i32
    return %arg0, %c0_i32 : i32, i32
  }
}

</mosaic_0001>

<bundles_post_ra>
// kernel: _patch_embed3d_apply.1
= control target key start
LH: loop header
LB: loop body
LE: loop exit
PB: predicated region body
PF: predicated region fallthrough
CT: control target
= control target key end

     0   :  { %s275_s1 = inlined_call_operand.vmem [shape: bf16[128,128], index: 1, kind: input, shape index: {}]   ;;  %s276_s0 = inlined_call_operand.vmem [shape: bf16[32,128], index: 0, kind: input, shape index: {}]   ;;  %s277_s2 = inlined_call_operand.vmem [shape: f32[1,128], index: 2, kind: input, shape index: {}]   ;;  %s278_s3 = inlined_call_operand.vmem [shape: f32[32,128], index: 3, kind: output, shape index: {}]  }
   0x1   :  { %v200_v0 = vld [vmem:[%s275_s1] sm:$0xff]   ;;  %v201_v1 = vld [vmem:[%s275_s1 + $0x8] sm:$0xff]   ;;  %v202_v2 = vld [vmem:[%s275_s1 + $0x10] sm:$0xff]  }
   0x2   :  { %180 = vmatprep.subr.bf16.mxu0 %v200_v0  ;;  %v203_v3 = vld [vmem:[%s275_s1 + $0x18] sm:$0xff]   ;;  %v208_v4 = vld [vmem:[%s276_s0] sm:$0xff]   ;;  %v205_v6 = vld [vmem:[%s275_s1 + $0x28] sm:$0xff]  }
   0x3   :  { %181 = vmatpush3.bf16.msra.mxu0 %v200_v0  ;;  %196 = vmatprep.mubr.bf16.mxu0 %v208_v4  ;;  %v204_v5 = vld [vmem:[%s275_s1 + $0x20] sm:$0xff]   ;;  %v206_v7 = vld [vmem:[%s275_s1 + $0x30] sm:$0xff]   ;;  %v207_v8 = vld [vmem:[%s275_s1 + $0x38] sm:$0xff]  }
   0x4   :  { %182 = vmatprep.subr.bf16.mxu0 %v201_v1  ;;  %v209_v9 = vld [vmem:[%s276_s0 + $0x8] sm:$0xff]   ;;  %v159_v10 = vld [vmem:[%s277_s2] ss:$0 sm:$0xff] }
   0x7   :  { %183 = vmatpush3.bf16.msra.mxu0 %v201_v1 }
   0x8   :  { %184 = vmatprep.subr.bf16.mxu0 %v202_v2 }
   0xb   :  { %185 = vmatpush3.bf16.msra.mxu0 %v202_v2 }
   0xc   :  { %186 = vmatprep.subr.bf16.mxu0 %v203_v3 }
   0xf   :  { %187 = vmatpush3.bf16.msra.mxu0 %v203_v3 }
  0x10   :  { %188 = vmatprep.subr.bf16.mxu0 %v204_v5 }
  0x13   :  { %189 = vmatpush3.bf16.msra.mxu0 %v204_v5 }
  0x14   :  { %190 = vmatprep.subr.bf16.mxu0 %v205_v6 }
  0x17   :  { %191 = vmatpush3.bf16.msra.mxu0 %v205_v6 }
  0x18   :  { %192 = vmatprep.subr.bf16.mxu0 %v206_v7 }
  0x1b   :  { %193 = vmatpush3.bf16.msra.mxu0 %v206_v7 }
  0x1c   :  { %194 = vmatprep.subr.bf16.mxu0 %v207_v8 }
  0x1f   :  { %195 = vmatpush3.bf16.msra.mxu0 %v207_v8 }
  0x22   :  { %197 = vmatmul.mubr.bf16.vlgmr.msra.gmra.mrb[0].mxu0 %v209_v9 }
  0xf5   :  { %v198_v11 = vpop.f32.mrb[0].mxu0 }
  0xf6   :  { %v145_v12 = vadd.f32 %v198_v11, %v159_v10  ;;  %v136_v13 = vpop.f32.mrb[1].mxu0 }
  0xf7   :  { %v137_v14 = vadd.f32 %v159_v10, %v136_v13  ;;  %v199_v15 = vpop.f32.mrb[2].mxu0 }
  0xf8   :  { %153 = vst [vmem:[%s278_s3 + $0x10] sm:$0xff] %v145_v12  ;;  %v148_v16 = vadd.f32 %v199_v15, %v159_v10  ;;  %v139_v17 = vpop.f32.mrb[3].mxu0 }
  0xf9   :  { %151 = vst [vmem:[%s278_s3] sm:$0xff] %v137_v14  ;;  %v140_v18 = vadd.f32 %v159_v10, %v139_v17 }
  0xfa   :  { %154 = vst [vmem:[%s278_s3 + $0x18] sm:$0xff] %v148_v16 }
  0xfb   :  { %152 = vst [vmem:[%s278_s3 + $0x8] sm:$0xff] %v140_v18 }

</bundles_post_ra>
